<compile_context>
chip_gen: v7x
topology: tpu7x:2x2x1
jax: 0.10.0
libtpu: 0.0.40
codegen_flags: <defaults>
</compile_context>

<pallas_src>
import jax
import jax.numpy as jnp
from jax import lax
from jax.experimental import pallas as pl
from jax.experimental.pallas import tpu as pltpu


def _proto_kernel(scale_ref, labels_ref, ftrain_ref, ftest_ref, out_ref):
    # scale_ref : SMEM (1,)            f32       -> learned scale_cls
    # labels_ref: VMEM (Bt, Ntr, K)    in_dtype  -> one-hot train labels
    # ftrain_ref: VMEM (Bt, Ntr, C)    in_dtype  -> train features
    # ftest_ref : VMEM (Bt, Nt,  C)    in_dtype  -> test features
    # out_ref   : VMEM (Bt, K,  Nt)    f32       -> scores (lane-dense, K/Nt
    #                                               transposed; wrapper fixes)
    labels = labels_ref[...]                       # (Bt, Ntr, K)
    ftrain = ftrain_ref[...]                       # (Bt, Ntr, C)
    ftest = ftest_ref[...]                         # (Bt, Nt,  C)

    bt, ntr, _ = labels.shape
    n_c = ftrain.shape[-1]

    # protos[b,k,c] = sum_n labels[b,n,k] * ftrain[b,n,c]   (MXU, f32 accum)
    # Channels on the lane axis -> every following VPU/XLU op is lane-dense.
    protos = lax.dot_general(
        labels, ftrain,
        dimension_numbers=(((1,), (1,)), ((0,), (0,))),
        preferred_element_type=jnp.float32)        # (Bt, K, C)

    # Per-class example counts, produced directly in the (Bt, K, 1) broadcast
    # layout (tiny batched matmul; avoids a sublane<->lane relayout).
    ones_col = jnp.ones((bt, ntr, 1), dtype=labels.dtype)
    counts = lax.dot_general(
        labels, ones_col,
        dimension_numbers=(((1,), (1,)), ((0,), (0,))),
        preferred_element_type=jnp.float32)        # (Bt, K, 1)
    # Matches the reference: no guard against empty classes (0/0 -> nan/inf).
    protos = protos / counts                       # (Bt, K, C)

    # ab_t[b,k,t] = <proto[b,k,:], ftest[b,t,:]>             (MXU, f32 accum)
    ab_t = lax.dot_general(
        protos.astype(ftest.dtype), ftest,
        dimension_numbers=(((2,), (2,)), ((0,), (0,))),
        preferred_element_type=jnp.float32)        # (Bt, K, Nt)

    # ||proto||^2 : native last-axis (lane/XLU) keepdims reduction.
    bb = jnp.sum(protos * protos, axis=2, keepdims=True)      # (Bt, K, 1)

    # ||test||^2 produced directly in its (Bt, 1, Nt) broadcast layout via a
    # ones-row batched matmul (no relayout of the reduced vector).
    ftest_f32 = ftest.astype(jnp.float32)
    ones_row = jnp.ones((bt, 1, n_c), dtype=jnp.float32)
    aa = lax.dot_general(
        ones_row, ftest_f32 * ftest_f32,
        dimension_numbers=(((2,), (2,)), ((0,), (0,))),
        preferred_element_type=jnp.float32)        # (Bt, 1, Nt)

    # Fold (-scale_cls / num_channels) into one scalar:
    #   -scale * (aa + bb - 2*ab) / C  ==  s*aa + s*bb - (2s)*ab,  s = -scale/C
    s = scale_ref[0] * jnp.float32(-1.0 / n_c)
    out = (s * aa + s * bb) - (2.0 * s) * ab_t     # (Bt, K, Nt)
    out_ref[...] = out.astype(out_ref.dtype)


def _ceil_to(x, m):
    return ((x + m - 1) // m) * m


def _vmem_capacity_bytes():
    """Physical VMEM per TensorCore; conservative fallback if not queryable."""
    try:
        return int(pltpu.get_tpu_info().vmem_capacity_bytes)
    except Exception:
        return 64 << 20        # v7x has 64 MiB / TC; v5e/v6e have 128 MiB


def _pick_block_batch(B, Ntr, Nt, C, K, in_itemsize, budget_bytes,
                      max_block_batch=None):
    """Pick the episodes-per-grid-step, accounting for I/O blocks (double-
    buffered) AND in-kernel temporaries, all padded to (8,128) tiles."""
    f32 = 4
    io_per_ep = in_itemsize * (
        _ceil_to(Ntr, 8) * _ceil_to(K, 128)        # labels block
        + _ceil_to(Ntr, 8) * _ceil_to(C, 128)      # train-feature block
        + _ceil_to(Nt, 8) * _ceil_to(C, 128)       # test-feature block
    ) + f32 * _ceil_to(K, 8) * _ceil_to(Nt, 128)   # output block
    temp_per_ep = f32 * (
        _ceil_to(K, 8) * _ceil_to(C, 128)          # protos
        + _ceil_to(K, 8) * _ceil_to(Nt, 128)       # ab_t / epilogue temp
        + _ceil_to(Nt, 8) * _ceil_to(C, 128)       # ftest^2
        + _ceil_to(K, 8) * 128                     # counts + bb
        + 8 * _ceil_to(Nt, 128))                   # aa
    per_ep = 2 * io_per_ep + temp_per_ep           # 2x = double buffering

    max_bt = max(1, min(B, budget_bytes // per_ep))
    if max_block_batch is not None:
        max_bt = max(1, min(max_bt, int(max_block_batch)))

    # Prefer an exact divisor of B (no padding) if it is at least half the
    # VMEM-optimal block; otherwise pad B up to a multiple of max_bt instead
    # of collapsing to bt=1 for prime / awkward batch sizes.
    for d in range(max_bt, 0, -1):
        if B % d == 0:
            if 2 * d >= max_bt:
                return d
            break
    return max_bt


def prototypical_network(features_test, features_train, labels_train, scale_cls,
                         *, max_block_batch=None):
    """JAX/Pallas equivalent of PrototypicalNetwork.forward.

    Returns scores of shape [batch, num_test_examples, nKnovel].
    Note: like the PyTorch module, classes with zero training examples yield
    a division by zero (inf/nan scores).
    """
    assert features_test.ndim == 3
    assert features_train.ndim == 3
    assert labels_train.ndim == 3
    B, Nt, C = features_test.shape
    _, Ntr, K = labels_train.shape
    assert features_train.shape == (B, Ntr, C)
    assert labels_train.shape[0] == B

    # bf16 inputs stay bf16 (MXU-native, half the HBM/VMEM bytes); everything
    # else (including integer one-hot labels) is carried as f32.
    in_dtype = jnp.bfloat16 if features_test.dtype == jnp.bfloat16 else jnp.float32
    ftest = features_test.astype(in_dtype)
    ftrain = features_train.astype(in_dtype)
    labels = labels_train.astype(in_dtype)
    scale = jnp.asarray(scale_cls, dtype=jnp.float32).reshape((1,))

    vmem_cap = _vmem_capacity_bytes()
    vmem_limit = min(vmem_cap * 3 // 4, 96 << 20)  # 48 MiB on v7x, 96 on v5e/v6e
    bt = _pick_block_batch(B, Ntr, Nt, C, K, jnp.dtype(in_dtype).itemsize,
                           budget_bytes=vmem_limit // 2,
                           max_block_batch=max_block_batch)

    n_steps = pl.cdiv(B, bt)
    b_pad = n_steps * bt
    if b_pad != B:
        pad = b_pad - B
        ftest = jnp.pad(ftest, ((0, pad), (0, 0), (0, 0)))
        ftrain = jnp.pad(ftrain, ((0, pad), (0, 0), (0, 0)))
        # Padded episodes get round-robin one-hot labels so counts stay > 0
        # (results are sliced off below either way).
        pad_lab = jax.nn.one_hot(jnp.arange(Ntr) % K, K, dtype=in_dtype)
        labels = jnp.concatenate(
            [labels, jnp.broadcast_to(pad_lab, (pad, Ntr, K))], axis=0)

    flops = b_pad * (2 * Ntr * C * K        # prototype matmul
                     + 2 * Nt * C * K       # test-vs-prototype matmul
                     + 2 * Ntr * K          # counts matmul
                     + 3 * Nt * C           # square + aa matmul
                     + 2 * K * C            # bb + normalize
                     + 5 * Nt * K)          # epilogue
    bytes_accessed = (jnp.dtype(in_dtype).itemsize
                      * b_pad * (Ntr * K + Ntr * C + Nt * C)
                      + 4 * b_pad * Nt * K + 4)
    cost = pl.CostEstimate(flops=int(flops), transcendentals=0,
                           bytes_accessed=int(bytes_accessed))

    out_knt = pl.pallas_call(
        _proto_kernel,
        out_shape=jax.ShapeDtypeStruct((b_pad, K, Nt), jnp.float32),
        grid_spec=pltpu.PrefetchScalarGridSpec(
            num_scalar_prefetch=0,
            grid=(n_steps,),
            in_specs=[
                pl.BlockSpec(memory_space=pltpu.MemorySpace.SMEM),   # scale_cls
                pl.BlockSpec((bt, Ntr, K), lambda b: (b, 0, 0)),     # labels_train
                pl.BlockSpec((bt, Ntr, C), lambda b: (b, 0, 0)),     # features_train
                pl.BlockSpec((bt, Nt, C), lambda b: (b, 0, 0)),      # features_test
            ],
            out_specs=pl.BlockSpec((bt, K, Nt), lambda b: (b, 0, 0)),
        ),
        compiler_params=pltpu.CompilerParams(
            dimension_semantics=("parallel",),
            vmem_limit_bytes=int(vmem_limit),
        ),
        cost_estimate=cost,
    )(scale, labels, ftrain, ftest)

    # Module contract is [B, num_test, K]; the kernel emits a lane-dense
    # (B, K, Nt) slab and one XLA transpose here restores the order.
    return jnp.swapaxes(out_knt[:B], 1, 2)


def _reference(features_test, features_train, labels_train, scale_cls):
    """Pure-JAX reference mirroring the PyTorch module (f32)."""
    ft = features_test.astype(jnp.float32)
    fr = features_train.astype(jnp.float32)
    lb = labels_train.astype(jnp.float32)
    labels_t = jnp.swapaxes(lb, 1, 2)                              # [B, K, Ntr]
    protos = jnp.einsum('bkn,bnc->bkc', labels_t, fr)              # [B, K, C]
    protos = protos / jnp.sum(labels_t, axis=2, keepdims=True)
    ab = jnp.einsum('btc,bkc->btk', ft, protos)
    aa = jnp.sum(ft ** 2, axis=2, keepdims=True)                   # [B, Nt, 1]
    bb = jnp.sum(protos ** 2, axis=2)[:, None, :]                  # [B, 1, K]
    dist = (aa + bb - 2.0 * ab) / ft.shape[2]
    return -scale_cls * dist


def _make_inputs(key, B, Ntr, Nt, C, K, dtype=jnp.float32):
    k1, k2 = jax.random.split(key)
    features_train = jax.random.normal(k1, (B, Ntr, C), dtype=jnp.float32)
    features_test = jax.random.normal(k2, (B, Nt, C), dtype=jnp.float32)
    # Deterministic one-hot train labels: Ntr // K examples per class.
    class_ids = jnp.tile(jnp.arange(K), Ntr // K)                  # [Ntr]
    labels_train = jax.nn.one_hot(class_ids, K, dtype=jnp.float32)
    labels_train = jnp.broadcast_to(labels_train, (B, Ntr, K))
    return (features_test.astype(dtype), features_train.astype(dtype),
            labels_train.astype(dtype))


def _run_case(key, B, Ntr, Nt, C, K, dtype=jnp.float32, atol=1e-4, rtol=1e-4,
              max_block_batch=None):
    ftest, ftrain, labels = _make_inputs(key, B, Ntr, Nt, C, K, dtype)
    scale_cls = jnp.float32(1.0)   # module default init

    scores = prototypical_network(ftest, ftrain, labels, scale_cls,
                                  max_block_batch=max_block_batch)
    jax.block_until_ready(scores)

    ref = _reference(ftest, ftrain, labels, scale_cls)
    assert scores.shape == (B, Nt, K)
    assert jnp.allclose(scores, ref, atol=atol, rtol=rtol)


if __name__ == "__main__":
    key = jax.random.PRNGKey(0)
    k_a, k_b, k_c, k_d = jax.random.split(key, 4)

    # Single grid step (whole batch fits in one block).
    _run_case(k_a, B=4, Ntr=8, Nt=8, C=32, K=4)
    # Small batch.
    _run_case(k_b, B=2, Ntr=8, Nt=8, C=32, K=4)
    # Awkward (prime) batch with a forced small block -> exercises the
    # pad-instead-of-collapse path (bt=4, B padded 5 -> 8).
    _run_case(k_c, B=5, Ntr=8, Nt=8, C=32, K=4, max_block_batch=4)
    # bf16 pass-through path (MXU-native inputs, f32 accumulation).
    _run_case(k_d, B=4, Ntr=8, Nt=8, C=32, K=4, dtype=jnp.bfloat16,
              atol=0.25, rtol=0.05)

    print("KERNEL_OK")
</pallas_src>

<mosaic_0001>
module attributes {stable_mosaic.version = 11 : i64} {
  func.func @_proto_kernel(%arg0: i32, %arg1: memref<1xf32, #tpu.memory_space<smem>>, %arg2: memref<4x8x4xf32, #tpu.memory_space<vmem>>, %arg3: memref<4x8x32xf32, #tpu.memory_space<vmem>>, %arg4: memref<4x8x32xf32, #tpu.memory_space<vmem>>, %arg5: memref<4x4x8xf32, #tpu.memory_space<vmem>>) attributes {dimension_semantics = [#tpu.dimension_semantics<parallel>], iteration_bounds = array<i64: 1>, scalar_prefetch = 0 : i64, scratch_operands = 0 : i64, tpu.core_type = #tpu.core_type<tc>, window_params = [{transform_indices = @transform_0, window_bounds = array<i64: 1>}, {transform_indices = @transform_1, window_bounds = array<i64: 4, 8, 4>}, {transform_indices = @transform_2, window_bounds = array<i64: 4, 8, 32>}, {transform_indices = @transform_3, window_bounds = array<i64: 4, 8, 32>}, {transform_indices = @transform_4, window_bounds = array<i64: 4, 4, 8>}]} {
    %c0 = arith.constant 0 : index
    %c0_0 = arith.constant 0 : index
    %c0_1 = arith.constant 0 : index
    %0 = vector.load %arg2[%c0, %c0_0, %c0_1] : memref<4x8x4xf32, #tpu.memory_space<vmem>>, vector<4x8x4xf32>
    %c0_2 = arith.constant 0 : index
    %c0_3 = arith.constant 0 : index
    %c0_4 = arith.constant 0 : index
    %1 = vector.load %arg3[%c0_2, %c0_3, %c0_4] : memref<4x8x32xf32, #tpu.memory_space<vmem>>, vector<4x8x32xf32>
    %c0_5 = arith.constant 0 : index
    %c0_6 = arith.constant 0 : index
    %c0_7 = arith.constant 0 : index
    %2 = vector.load %arg4[%c0_5, %c0_6, %c0_7] : memref<4x8x32xf32, #tpu.memory_space<vmem>>, vector<4x8x32xf32>
    %cst = arith.constant dense<0.000000e+00> : vector<4x4x32xf32>
    %3 = tpu.matmul %0, %1, %cst {dimension_numbers = #tpu.dot_dimension_numbers<[1], [1], [2], [2], [0, 0, 0, 2, 1, 2], [0], [0]>} : vector<4x8x4xf32>, vector<4x8x32xf32>, vector<4x4x32xf32> -> vector<4x4x32xf32>
    %cst_8 = arith.constant 1.000000e+00 : f32
    %4 = vector.broadcast %cst_8 : f32 to vector<4x8x1xf32>
    %cst_9 = arith.constant dense<0.000000e+00> : vector<4x4x1xf32>
    %5 = tpu.matmul %0, %4, %cst_9 {dimension_numbers = #tpu.dot_dimension_numbers<[1], [1], [2], [2], [0, 0, 0, 2, 1, 2], [0], [0]>} : vector<4x8x4xf32>, vector<4x8x1xf32>, vector<4x4x1xf32> -> vector<4x4x1xf32>
    %6 = vector.broadcast %5 : vector<4x4x1xf32> to vector<4x4x32xf32>
    %7 = arith.divf %3, %6 : vector<4x4x32xf32>
    %cst_10 = arith.constant dense<0.000000e+00> : vector<4x4x8xf32>
    %8 = tpu.matmul %7, %2, %cst_10 {dimension_numbers = #tpu.dot_dimension_numbers<[2], [2], [1], [1], [0, 0, 0, 1, 1, 1], [0], [0]>} : vector<4x4x32xf32>, vector<4x8x32xf32>, vector<4x4x8xf32> -> vector<4x4x8xf32>
    %9 = arith.mulf %7, %7 : vector<4x4x32xf32>
    %cst_11 = arith.constant dense<0.000000e+00> : vector<4x4xf32>
    %10 = vector.multi_reduction <add>, %9, %cst_11 [2] : vector<4x4x32xf32> to vector<4x4xf32>
    %11 = vector.shape_cast %10 : vector<4x4xf32> to vector<4x4x1xf32>
    %cst_12 = arith.constant 1.000000e+00 : f32
    %12 = vector.broadcast %cst_12 : f32 to vector<4x1x32xf32>
    %13 = arith.mulf %2, %2 : vector<4x8x32xf32>
    %cst_13 = arith.constant dense<0.000000e+00> : vector<4x1x8xf32>
    %14 = tpu.matmul %12, %13, %cst_13 {dimension_numbers = #tpu.dot_dimension_numbers<[2], [2], [1], [1], [0, 0, 0, 1, 1, 1], [0], [0]>} : vector<4x1x32xf32>, vector<4x8x32xf32>, vector<4x1x8xf32> -> vector<4x1x8xf32>
    %c0_14 = arith.constant 0 : index
    %15 = memref.load %arg1[%c0_14] : memref<1xf32, #tpu.memory_space<smem>>
    %cst_15 = arith.constant -3.125000e-02 : f32
    %16 = arith.mulf %15, %cst_15 : f32
    %17 = vector.broadcast %16 : f32 to vector<4x1x8xf32>
    %18 = arith.mulf %17, %14 : vector<4x1x8xf32>
    %19 = vector.broadcast %16 : f32 to vector<4x4x1xf32>
    %20 = arith.mulf %19, %11 : vector<4x4x1xf32>
    %21 = vector.broadcast %18 : vector<4x1x8xf32> to vector<4x4x8xf32>
    %22 = vector.broadcast %20 : vector<4x4x1xf32> to vector<4x4x8xf32>
    %23 = arith.addf %21, %22 : vector<4x4x8xf32>
    %cst_16 = arith.constant 2.000000e+00 : f32
    %24 = arith.mulf %cst_16, %16 : f32
    %25 = vector.broadcast %24 : f32 to vector<4x4x8xf32>
    %26 = arith.mulf %25, %8 : vector<4x4x8xf32>
    %27 = arith.subf %23, %26 : vector<4x4x8xf32>
    %c0_17 = arith.constant 0 : index
    %c0_18 = arith.constant 0 : index
    %c0_19 = arith.constant 0 : index
    %28 = vector.load %arg5[%c0_17, %c0_18, %c0_19] : memref<4x4x8xf32, #tpu.memory_space<vmem>>, vector<4x4x8xf32>
    tpu.vector_store %arg5[%c0_17, %c0_18, %c0_19], %27 {strides = array<i32>} : memref<4x4x8xf32, #tpu.memory_space<vmem>>, vector<4x4x8xf32>,
    return
  }
  func.func @transform_0(%arg0: i32) -> i32 {
    %c0_i32 = arith.constant 0 : i32
    %c0_i32_0 = arith.constant 0 : i32
    return %c0_i32 : i32
  }
  func.func @transform_1(%arg0: i32) -> (i32, i32, i32) {
    %c0_i32 = arith.constant 0 : i32
    %c0_i32_0 = arith.constant 0 : i32
    %c0_i32_1 = arith.constant 0 : i32
    return %arg0, %c0_i32, %c0_i32_0 : i32, i32, i32
  }
  func.func @transform_2(%arg0: i32) -> (i32, i32, i32) {
    %c0_i32 = arith.constant 0 : i32
    %c0_i32_0 = arith.constant 0 : i32
    %c0_i32_1 = arith.constant 0 : i32
    return %arg0, %c0_i32, %c0_i32_0 : i32, i32, i32
  }
  func.func @transform_3(%arg0: i32) -> (i32, i32, i32) {
    %c0_i32 = arith.constant 0 : i32
    %c0_i32_0 = arith.constant 0 : i32
    %c0_i32_1 = arith.constant 0 : i32
    return %arg0, %c0_i32, %c0_i32_0 : i32, i32, i32
  }
  func.func @transform_4(%arg0: i32) -> (i32, i32, i32) {
    %c0_i32 = arith.constant 0 : i32
    %c0_i32_0 = arith.constant 0 : i32
    %c0_i32_1 = arith.constant 0 : i32
    return %arg0, %c0_i32, %c0_i32_0 : i32, i32, i32
  }
}

</mosaic_0001>

<bundles_post_ra>
// kernel: tpu_custom_call.1
= control target key start
LH: loop header
LB: loop body
LE: loop exit
PB: predicated region body
PF: predicated region fallthrough
CT: control target
= control target key end

     0   :  { %10 = vsyncpa [#allocation4], 0  ;;  %s1836_s0 = inlined_call_operand.<no memory space> [shape: f32[1], index: 0, kind: input, shape index: {}]   ;;  %s1837_s1 = inlined_call_operand.vmem [shape: f32[4,8,4], index: 1, kind: input, shape index: {}]   ;;  %s1838_s2 = inlined_call_operand.vmem [shape: f32[4,8,32], index: 2, kind: input, shape index: {}]   ;;  %s1839_s3 = inlined_call_operand.hbm [shape: f32[4,8,32], index: 3, kind: input, shape index: {}]   ;;  %s1840_s4 = inlined_call_operand.hbm [shape: f32[4,4,8], index: 4, kind: output, shape index: {}]  }
   0x1   :  { %11 = vsyncpa [#allocation5], 0  ;;  %s1662_s15 = smov [#allocation3]   ;;  %s1614_s19 = scalar_lea.hbm %s1839_s3, 512 }
   0x2   :  { %s23_s16 = sshll.u32 %s1662_s15, 4  ;;  %p1615_p0 = scmp.ne.s32.totalorder %s1839_s3, %s1614_s19  ;;  %s24_s16 = int_to_ptr.vmem [resolvable:$true] %s23_s16 }
   0x3   :  { %p1618_p1 = scmp.lt.u32.totalorder %s1614_s19, %s1839_s3 }
   0x5   :  { %p1620_p2 = pnand %p1618_p1, %p1615_p0 }
   0x7   :  { %1623 = shalt.err (!%p1620_p2)
}
   0x8   :  { %s1624_s24 = scalar_lea.vmem %s24_s16, 512  ;;  %p1629_p4 = scmp.lt.s32.totalorder %s24_s16, %s24_s16 }
   0x9   :  { %p1625_p3 = scmp.ne.s32.totalorder %s24_s16, %s1624_s24  ;;  %p1630_p5 = scmp.lt.s32.totalorder %s1624_s24, %s1624_s24 }
   0xb   :  { %p1631_p6 = por %p1630_p5, %p1629_p4 }
   0xd   :  { %p1632_p7 = pnand %p1631_p6, %p1625_p3 }
   0xf   :  { %1635 = shalt.err (!%p1632_p7)
}
  0x10   :  { %s1663_s25 = smov 128   ;;  %s1664_s26 = smov 8  }
  0x11   :  { %29 = dma.hbm_to_vmem [thread:$0]  %s1839_s3, 512, %s24_s16, [#allocation4], %s1663_s25, %s1663_s25, %s1664_s26  }
  0x12   :  { %1658 = dma.done.wait [#allocation4], 512  }
  0x13   :  { %1659 = vsyncadd [#allocation4], 4294966784  ;;  %v1665_v0 = vmov 0.0   ;;  %vm1666_vm0 = vmmov 0   ;;  %v33_v1 = vld [vmem:[%s1837_s1] sm:$0xff]  ;;  %v35_v2 = vld [vmem:[%s1837_s1 + $0x10] sm:$0xff]  ;;  %v1406_v61 = vlaneseq }
  0x14   :  { %1514 = vmatprep.subr.mxu0 %v1665_v0  ;;  %1516 = vmatprep.mubr.msk.f32.mxu0 %vm1666_vm0, %v1665_v0  ;;  %v37_v3 = vld [vmem:[%s1838_s2] sm:$0xff]  ;;  %v34_v4 = vld [vmem:[%s1837_s1 + $0x8] sm:$0xff]  ;;  %v36_v5 = vld [vmem:[%s1837_s1 + $0x18] sm:$0xff]  ;;  %vm77_vm1 = vcmask 64512   ;;  %v1667_v13 = vmov 1.0   ;;  %v1668_v14 = vmov 0  }
  0x15   :  { %1519 = vmatprep.subr.mxu1 %v1665_v0  ;;  %1521 = vmatprep.mubr.msk.f32.mxu1 %vm1666_vm0, %v1665_v0  ;;  %v38_v6 = vld [vmem:[%s1838_s2 + $0x8] sm:$0xff]  ;;  %v39_v7 = vld [vmem:[%s1838_s2 + $0x10] sm:$0xff]  ;;  %v40_v10 = vld [vmem:[%s1838_s2 + $0x18] sm:$0xff]  ;;  %vm774_vm2 = vcmask 261120   ;;  %vm1083_vm3 = vcmask 257024   ;;  %s1396_s18 = smul.f32 -0.03125, %s1836_s0 }
  0x16   :  { %45 = vxpose.xlu0.b32.start.end [1/1] (short) (narrow) %v33_v1, 8  ;;  %256 = vxpose.xlu1.b32.start.end [1/1] (short) (narrow) %v35_v2, 8  ;;  %v41_v31 = vld [vmem:[#allocation3] sm:$0xff]  ;;  %v42_v32 = vld [vmem:[#allocation3 + $0x8] sm:$0xff]  ;;  %v43_v39 = vld [vmem:[#allocation3 + $0x10] sm:$0xff]  ;;  %v1407_v1 = vshrl.u32 %v1406_v61, 7 }
  0x17   :  { %1515 = vmatpush3.msra.mxu0 %v37_v3  ;;  %1520 = vmatpush3.msra.mxu1 %v38_v6  ;;  %v44_v44 = vld [vmem:[#allocation3 + $0x18] sm:$0xff]  ;;  %v1096_v47 = vmul.f32 %v41_v31, %v41_v31  ;;  %v1097_v52 = vmul.f32 %v42_v32, %v42_v32  ;;  %v1098_v53 = vmul.f32 %v43_v39, %v43_v39  ;;  %s1426_s19 = smul.f32 2.0, %s1396_s18  ;;  %vm1436_vm4 = vcmask 60416   ;;  %s1669_s0 = smov [#allocation6]  }
  0x18   :  { %1524 = vmatprep.subr.mxu0 %v1665_v0  ;;  %1529 = vmatprep.subr.mxu1 %v1665_v0  ;;  %v1099_v57 = vmul.f32 %v44_v44, %v44_v44  ;;  %v1408_v6 = vsub.s32 0, %v1407_v1  ;;  %s1446_s20 = sshll.u32 %s1669_s0, 4  ;;  %s1447_s20 = int_to_ptr.vmem [resolvable:$true] %s1446_s20 }
  0x19   :  { %s1636_s21 = scalar_lea.vmem %s1447_s20, 256  ;;  %p1641_p9 = scmp.lt.s32.totalorder %s1447_s20, %s1447_s20 }
  0x1a   :  { %151 = vxpose.xlu0.b32.start.end [1/1] (short) (narrow) %v34_v4, 8  ;;  %361 = vxpose.xlu1.b32.start.end [1/1] (short) (narrow) %v36_v5, 8  ;;  %p1637_p8 = scmp.ne.s32.totalorder %s1447_s20, %s1636_s21  ;;  %p1642_p10 = scmp.lt.s32.totalorder %s1636_s21, %s1636_s21 }
  0x1c   :  { %p1643_p11 = por %p1642_p10, %p1641_p9 }
  0x1e   :  { %p1644_p12 = pnand %p1643_p11, %p1637_p8 }
  0x38   :  { %1605 = vset.pattern.permute.xlu1 %v1668_v14 }
  0x43   :  { %1604 = vset.pattern.permute.xlu0 %v1668_v14 }
  0x96   :  { %v61_v8 = vpop.trf.xlu0  ;;  %v272_v9 = vpop.trf.xlu1 }
  0x97   :  { %1517 = vmatmul.mubr.msk.f32.vlgmr.msra.gmra.mrb[0].mxu0 %vm77_vm1, %v61_v8 }
  0x98   :  { %1525 = vmatpush3.msra.mxu0 %v39_v7  ;;  %1526 = vmatprep.mubr.msk.f32.mxu0 %vm1666_vm0, %v1665_v0 }
  0x99   :  { %1534 = vmatprep.subr.mxu0 %v1665_v0 }
  0x9a   :  { %v167_v11 = vpop.trf.xlu0  ;;  %v377_v12 = vpop.trf.xlu1 }
  0x9b   :  { %1522 = vmatmul.mubr.msk.f32.vlgmr.msra.gmra.mrb[0].mxu1 %vm77_vm1, %v167_v11  ;;  %1527 = vmatmul.mubr.msk.f32.vlgmr.msra.gmra.mrb[2].mxu0 %vm77_vm1, %v272_v9 }
  0x9c   :  { %1530 = vmatpush3.msra.mxu1 %v40_v10  ;;  %1531 = vmatprep.mubr.msk.f32.mxu1 %vm1666_vm0, %v1665_v0 }
  0x9d   :  { %1535 = vmatpush3.msra.mxu0 %v1667_v13  ;;  %1536 = vmatprep.mubr.msk.f32.mxu0 %vm1666_vm0, %v1665_v0 }
  0x9e   :  { %1539 = vmatprep.subr.mxu1 %v1665_v0  ;;  %1544 = vmatprep.subr.mxu0 %v1665_v0 }
  0x9f   :  { %1532 = vmatmul.mubr.msk.f32.vlgmr.msra.gmra.mrb[2].mxu1 %vm77_vm1, %v377_v12  ;;  %1537 = vmatmul.mubr.msk.f32.vlgmr.msra.gmra.mrb[4].mxu0 %vm77_vm1, %v61_v8 }
  0xa0   :  { %1540 = vmatpush3.msra.mxu1 %v1667_v13  ;;  %1541 = vmatprep.mubr.msk.f32.mxu1 %vm1666_vm0, %v1665_v0 }
  0xa1   :  { %1545 = vmatpush3.msra.mxu0 %v1667_v13  ;;  %1546 = vmatprep.mubr.msk.f32.mxu0 %vm1666_vm0, %v1665_v0 }
  0xa2   :  { %1549 = vmatprep.subr.mxu1 %v1665_v0  ;;  %1554 = vmatprep.subr.mxu0 %v1665_v0 }
  0xa3   :  { %1542 = vmatmul.mubr.msk.f32.vlgmr.msra.gmra.mrb[4].mxu1 %vm77_vm1, %v167_v11  ;;  %1547 = vmatmul.mubr.msk.f32.vlgmr.msra.gmra.mrb[6].mxu0 %vm77_vm1, %v272_v9 }
  0xa4   :  { %1550 = vmatpush3.msra.mxu1 %v1667_v13  ;;  %1551 = vmatprep.mubr.msk.f32.mxu1 %vm1666_vm0, %v1665_v0 }
  0xa5   :  { %1556 = vmatprep.mubr.msk.f32.mxu0 %vm1666_vm0, %v1665_v0  ;;  %1559 = vmatprep.subr.mxu1 %v1665_v0 }
  0xa7   :  { %1552 = vmatmul.mubr.msk.f32.vlgmr.msra.gmra.mrb[6].mxu1 %vm77_vm1, %v377_v12  ;;  %v1427_v12 = vstv %s1426_s19 }
  0xa8   :  { %1561 = vmatprep.mubr.msk.f32.mxu1 %vm1666_vm0, %v1665_v0  ;;  %1555 = vmatpush3.xpose.msk.msra.mxu0 %vm774_vm2, %v41_v31 }
  0xa9   :  { %1564 = vmatprep.subr.mxu0 %v1665_v0 }
  0xab   :  { %1560 = vmatpush3.xpose.msk.msra.mxu1 %vm774_vm2, %v42_v32 }
  0xac   :  { %1569 = vmatprep.subr.mxu1 %v1665_v0 }
 0x16a   :  { %v147_v15 = vpop.f32.mrb[0].mxu0 }
 0x16b   :  { %v1518_v16 = vpop.f32.mrb[1].mxu0 }
 0x16e   :  { %v252_v17 = vpop.f32.mrb[0].mxu1  ;;  %v357_v18 = vpop.f32.mrb[2].mxu0 }
 0x16f   :  { %v1523_v19 = vpop.f32.mrb[1].mxu1  ;;  %v1528_v20 = vpop.f32.mrb[3].mxu0 }
 0x172   :  { %v462_v21 = vpop.f32.mrb[2].mxu1  ;;  %v532_v22 = vpop.f32.mrb[4].mxu0 }
 0x173   :  { %748 = vperm.xlu0 %1604, %v532_v22   ;;  %v1533_v23 = vpop.f32.mrb[3].mxu1  ;;  %v1538_v24 = vpop.f32.mrb[5].mxu0 }
 0x176   :  { %v602_v25 = vpop.f32.mrb[4].mxu1  ;;  %v672_v26 = vpop.f32.mrb[6].mxu0 }
 0x177   :  { %v1548_v27 = vpop.f32.mrb[7].mxu0  ;;  %753 = vperm.xlu1 %1605, %v602_v25   ;;  %v1543_v28 = vpop.f32.mrb[5].mxu1 }
 0x17a   :  { %v742_v29 = vpop.f32.mrb[6].mxu1 }
 0x17b   :  { %758 = vperm.xlu1 %1605, %v672_v26   ;;  %v1553_v30 = vpop.f32.mrb[7].mxu1 }
 0x17f   :  { %763 = vperm.xlu1 %1605, %v742_v29  }
 0x1f2   :  { %v749_v33 = vpop.permute.xlu0 %748 }
 0x1f3   :  { %1606 = vrcp.f32 %v749_v33 }
 0x1f6   :  { %v754_v34 = vpop.permute.xlu1 %753 }
 0x1f7   :  { %1608 = vrcp.f32 %v754_v34 }
 0x1fa   :  { %v759_v35 = vpop.permute.xlu1 %758 }
 0x1fb   :  { %1610 = vrcp.f32 %v759_v35 }
 0x1fd   :  { %v1607_v36 = vpop.eup %1606 }
 0x1fe   :  { %v767_v37 = vmul.f32 %v1607_v36, %v147_v15  ;;  %v764_v38 = vpop.permute.xlu1 %763 }
 0x1ff   :  { %1612 = vrcp.f32 %v764_v38 }
 0x200   :  { %1557 = vmatmul.mubr.msk.f32.vlgmr.msra.gmra.mrb[8].mxu0 %vm774_vm2, %v767_v37  ;;  %v1079_v40 = vmul.f32 %v767_v37, %v767_v37 }
 0x201   :  { %v1609_v41 = vpop.eup %1608  ;;  %1565 = vmatpush3.xpose.msk.msra.mxu0 %vm774_vm2, %v43_v39  ;;  %1566 = vmatprep.mubr.msk.f32.mxu0 %vm1666_vm0, %v1665_v0 }
 0x202   :  { %v769_v42 = vmul.f32 %v1609_v41, %v252_v17  ;;  %v1084_v43 = vsel %vm1083_vm3, %v1079_v40, 0.0  ;;  %1574 = vmatprep.subr.mxu0 %v1665_v0 }
 0x203   :  { %1085 = vadd.xlane.f32.xlu1 %v1084_v43 }
 0x204   :  { %1562 = vmatmul.mubr.msk.f32.vlgmr.msra.gmra.mrb[8].mxu1 %vm774_vm2, %v769_v42  ;;  %v1080_v45 = vmul.f32 %v769_v42, %v769_v42 }
 0x205   :  { %v1611_v46 = vpop.eup %1610  ;;  %1570 = vmatpush3.xpose.msk.msra.mxu1 %vm774_vm2, %v44_v44  ;;  %1571 = vmatprep.mubr.msk.f32.mxu1 %vm1666_vm0, %v1665_v0 }
 0x206   :  { %v771_v48 = vmul.f32 %v1611_v46, %v357_v18  ;;  %v1087_v49 = vsel %vm1083_vm3, %v1080_v45, 0.0  ;;  %1579 = vmatprep.subr.mxu1 %v1665_v0 }
 0x207   :  { %1088 = vadd.xlane.f32.xlu0 %v1087_v49 }
 0x208   :  { %1567 = vmatmul.mubr.msk.f32.vlgmr.msra.gmra.mrb[10].mxu0 %vm774_vm2, %v771_v48  ;;  %v1081_v50 = vmul.f32 %v771_v48, %v771_v48 }
 0x209   :  { %v1613_v51 = vpop.eup %1612  ;;  %1575 = vmatpush3.xpose.msk.msra.mxu0 %vm774_vm2, %v1096_v47  ;;  %1576 = vmatprep.mubr.msk.f32.mxu0 %vm1666_vm0, %v1665_v0 }
 0x20a   :  { %v773_v54 = vmul.f32 %v1613_v51, %v462_v21  ;;  %v1090_v55 = vsel %vm1083_vm3, %v1081_v50, 0.0  ;;  %1584 = vmatprep.subr.mxu0 %v1665_v0 }
 0x20b   :  { %1091 = vadd.xlane.f32.xlu0 %v1090_v55 }
 0x20c   :  { %1572 = vmatmul.mubr.msk.f32.vlgmr.msra.gmra.mrb[10].mxu1 %vm774_vm2, %v773_v54  ;;  %1577 = vmatmul.mubr.msk.f32.vlgmr.msra.gmra.mrb[12].mxu0 %vm774_vm2, %v1667_v13  ;;  %v1082_v56 = vmul.f32 %v773_v54, %v773_v54 }
 0x20d   :  { %1580 = vmatpush3.xpose.msk.msra.mxu1 %vm774_vm2, %v1097_v52  ;;  %1585 = vmatpush3.xpose.msk.msra.mxu0 %vm774_vm2, %v1098_v53 }
 0x20e   :  { %1581 = vmatprep.mubr.msk.f32.mxu1 %vm1666_vm0, %v1665_v0  ;;  %1589 = vmatprep.subr.mxu1 %v1665_v0  ;;  %v1093_v58 = vsel %vm1083_vm3, %v1082_v56, 0.0 }
 0x20f   :  { %1094 = vadd.xlane.f32.xlu1 %v1093_v58  ;;  %1586 = vmatprep.mubr.msk.f32.mxu0 %vm1666_vm0, %v1665_v0 }
 0x210   :  { %1582 = vmatmul.mubr.msk.f32.vlgmr.msra.gmra.mrb[12].mxu1 %vm774_vm2, %v1667_v13  ;;  %1587 = vmatmul.mubr.msk.f32.vlgmr.msra.gmra.mrb[14].mxu0 %vm774_vm2, %v1667_v13 }
 0x211   :  { %1590 = vmatpush3.xpose.msk.msra.mxu1 %vm774_vm2, %v1099_v57  ;;  %1591 = vmatprep.mubr.msk.f32.mxu1 %vm1666_vm0, %v1665_v0  ;;  %v1397_v0 = vstv %s1396_s18 }
 0x214   :  { %1592 = vmatmul.mubr.msk.f32.vlgmr.msra.gmra.mrb[14].mxu1 %vm774_vm2, %v1667_v13 }
 0x290   :  { %v1086_v5 = vpop.xlane.xlu1 %1085 }
 0x291   :  { %v1402_v13 = vmul.f32 %v1397_v0, %v1086_v5 }
 0x294   :  { %v1089_v3 = vpop.xlane.xlu0 %1088 }
 0x295   :  { %v1403_v24 = vmul.f32 %v1397_v0, %v1089_v3 }
 0x298   :  { %v1092_v14 = vpop.xlane.xlu0 %1091 }
 0x299   :  { %v1404_v25 = vmul.f32 %v1397_v0, %v1092_v14 }
 0x29c   :  { %v1095_v29 = vpop.xlane.xlu1 %1094 }
 0x29d   :  { %v1405_v37 = vmul.f32 %v1397_v0, %v1095_v29 }
 0x2d3   :  { %v847_v59 = vpop.f32.mrb[8].mxu0 }
 0x2d4   :  { %v1558_v60 = vpop.f32.mrb[9].mxu0  ;;  %v1428_v18 = vmul.f32 %v1427_v12, %v847_v59 }
 0x2d7   :  { %v923_v62 = vpop.f32.mrb[8].mxu1 }
 0x2d8   :  { %v1563_v63 = vpop.f32.mrb[9].mxu1  ;;  %v1429_v30 = vmul.f32 %v1427_v12, %v923_v62 }
 0x2db   :  { %v999_v2 = vpop.f32.mrb[10].mxu0 }
 0x2dc   :  { %v1568_v4 = vpop.f32.mrb[11].mxu0  ;;  %v1430_v32 = vmul.f32 %v1427_v12, %v999_v2 }
 0x2df   :  { %v1075_v7 = vpop.f32.mrb[10].mxu1  ;;  %v1172_v8 = vpop.f32.mrb[12].mxu0 }
 0x2e0   :  { %v1398_v9 = vmul.f32 %v1397_v0, %v1172_v8  ;;  %v1573_v10 = vpop.f32.mrb[11].mxu1  ;;  %v1578_v11 = vpop.f32.mrb[13].mxu0  ;;  %v1431_v41 = vmul.f32 %v1427_v12, %v1075_v7 }
 0x2e2   :  { %v1409_v15 = vrot.slane %v1398_v9, %v1408_v6 }
 0x2e3   :  { %v1245_v16 = vpop.f32.mrb[12].mxu1  ;;  %v1318_v17 = vpop.f32.mrb[14].mxu0 }
 0x2e4   :  { %v1422_v19 = vadd.f32 %v1409_v15, %v1402_v13  ;;  %v1399_v20 = vmul.f32 %v1397_v0, %v1245_v16  ;;  %v1400_v21 = vmul.f32 %v1397_v0, %v1318_v17  ;;  %v1583_v22 = vpop.f32.mrb[13].mxu1  ;;  %v1588_v23 = vpop.f32.mrb[15].mxu0 }
 0x2e6   :  { %v1432_v26 = vsub.f32 %v1422_v19, %v1428_v18  ;;  %v1413_v27 = vrot.slane %v1399_v20, %v1408_v6  ;;  %v1417_v28 = vrot.slane %v1400_v21, %v1408_v6 }
 0x2e7   :  { %v1391_v31 = vpop.f32.mrb[14].mxu1 }
 0x2e8   :  { %1437 = vst.msk [vmem:[#allocation6] sm:$0xf] %vm1436_vm4, %v1432_v26  ;;  %v1423_v33 = vadd.f32 %v1413_v27, %v1403_v24  ;;  %v1424_v34 = vadd.f32 %v1417_v28, %v1404_v25  ;;  %v1401_v35 = vmul.f32 %v1397_v0, %v1391_v31  ;;  %v1593_v36 = vpop.f32.mrb[15].mxu1 }
 0x2ea   :  { %v1433_v38 = vsub.f32 %v1423_v33, %v1429_v30  ;;  %v1434_v39 = vsub.f32 %v1424_v34, %v1430_v32  ;;  %v1421_v40 = vrot.slane %v1401_v35, %v1408_v6 }
 0x2ec   :  { %1438 = vst.msk [vmem:[#allocation6 + $0x4] sm:$0xf] %vm1436_vm4, %v1433_v38  ;;  %1439 = vst.msk [vmem:[#allocation6 + $0x8] sm:$0xf] %vm1436_vm4, %v1434_v39  ;;  %v1425_v42 = vadd.f32 %v1421_v40, %v1405_v37 }
 0x2ee   :  { %v1435_v43 = vsub.f32 %v1425_v42, %v1431_v41 }
 0x2f0   :  { %1440 = vst.msk [vmem:[#allocation6 + $0xc] sm:$0xf] %vm1436_vm4, %v1435_v43 }
 0x2f1   :  { %1647 = shalt.err (!%p1644_p12)
}
 0x2f2   :  { %s1648_s24 = scalar_lea.hbm %s1840_s4, 256 }
 0x2f3   :  { %p1649_p13 = scmp.ne.s32.totalorder %s1840_s4, %s1648_s24  ;;  %p1652_p0 = scmp.lt.u32.totalorder %s1648_s24, %s1840_s4 }
 0x2f5   :  { %p1654_p1 = pnand %p1652_p0, %p1649_p13 }
 0x2f7   :  { %1657 = shalt.err (!%p1654_p1)
}
 0x2f8   :  { %s1670_s29 = smov 64   ;;  %s1671_s30 = smov 4  }
 0x2f9   :  { %1452 = dma.vmem_to_hbm [thread:$0]  %s1447_s20, 256, %s1840_s4, [#allocation5], %s1670_s29, %s1670_s29, %s1671_s30  }
 0x2fa   :  { %1660 = dma.done.wait [#allocation5], 256  }
 0x2fb   :  { %1661 = vsyncadd [#allocation5], 4294967040 }
 0x2fc   :  { %1456 = vsyncpa [#allocation4], 1 }
 0x2fd   :  { %1457 = vsyncpa [#allocation5], 1 }

</bundles_post_ra>
